<compile_context>
chip_gen: v5e
topology: v5e:2x2
jax: 0.10.0
libtpu: 0.0.40
codegen_flags: <defaults>
</compile_context>

<pallas_src>
import jax
import jax.numpy as jnp
from jax.experimental import pallas as pl
from jax.experimental.pallas import tpu as pltpu


def _round_up(x, m):
    return ((x + m - 1) // m) * m


def _nbytes(shape, dtype):
    n = 1
    for d in shape:
        n *= int(d)
    return n * jnp.dtype(dtype).itemsize


def _mlp_kernel(x_ref, w1_ref, b1_ref, w2_ref, b2_ref, o_ref):
    # Cast the x tile to the weight dtype inside VMEM (no-op for f32); this is
    # how the optional bf16 MXU path is taken without any extra HBM pass.
    x = x_ref[...].astype(w1_ref.dtype)
    # fc1 + ReLU: MXU matmul with f32 accumulation, epilogue in f32.
    h = jnp.dot(x, w1_ref[...], preferred_element_type=jnp.float32)
    h = jnp.maximum(h + b1_ref[...], 0.0)
    # fc2 + ReLU: cast only immediately before the second matmul.
    y = jnp.dot(h.astype(w2_ref.dtype), w2_ref[...],
                preferred_element_type=jnp.float32)
    y = jnp.maximum(y + b2_ref[...], 0.0)
    o_ref[...] = y.astype(o_ref.dtype)


def prepare_params(w1, b1, w2, b2, *, matmul_dtype=None):
    """One-time packing of torch-layout Linear params for the kernel.

    w1: (H, H) torch layout (out, in); b1: (H,)
    w2: (O, H) torch layout (out, in); b2: (O,)

    Weights are transposed to (in, out) and zero-padded so output-feature dims
    are multiples of 128 lanes (exact for matmul + bias + ReLU).  fc1's K dim
    is left at H (x is never padded); fc2's K dim is padded because fc1's
    padded output columns are exactly zero.  Optionally casts weights (not
    biases) to matmul_dtype (e.g. jnp.bfloat16) once, here, instead of per
    forward call.
    """
    H = int(w1.shape[1])
    O = int(w2.shape[0])
    H1p = _round_up(H, 128)
    Op = _round_up(O, 128)
    f32 = jnp.float32

    w1t = jnp.asarray(w1, f32).T                       # (in=H, out=H)
    w2t = jnp.asarray(w2, f32).T                       # (in=H, out=O)
    w1p = jnp.zeros((H, H1p), f32).at[:, :H].set(w1t)
    b1p = jnp.zeros((1, H1p), f32).at[:, :H].set(jnp.asarray(b1, f32).reshape(1, -1))
    w2p = jnp.zeros((H1p, Op), f32).at[:H, :O].set(w2t)
    b2p = jnp.zeros((1, Op), f32).at[:, :O].set(jnp.asarray(b2, f32).reshape(1, -1))

    if matmul_dtype is not None:
        w1p = w1p.astype(matmul_dtype)
        w2p = w2p.astype(matmul_dtype)
    return w1p, b1p, w2p, b2p


def _resident_spec(shape, single_buffer):
    """Constant-index (VMEM-resident) BlockSpec; single-buffered if supported."""
    if single_buffer and hasattr(pl, "Buffered"):
        try:
            return pl.BlockSpec(shape, lambda i: (0, 0),
                                pipeline_mode=pl.Buffered(1))
        except TypeError:
            pass
    return pl.BlockSpec(shape, lambda i: (0, 0))


def network3_forward(x, w1p, b1p, w2p, b2p, output_dim=None, *,
                     tile_m=1024, out_dtype=None, single_buffer_weights=True):
    """Forward pass of Network3 on pre-packed params from `prepare_params`.

    x: (B, H) unpadded.  Returns (B, output_dim) in `out_dtype` (default x.dtype).
    """
    B, H = x.shape
    H1p = w1p.shape[1]
    Op = w2p.shape[1]
    O = Op if output_dim is None else int(output_dim)
    out_dtype = out_dtype or x.dtype

    # Row tile: big enough to amortize per-step overhead, but keep >= 2 grid
    # steps when possible so the "parallel" axis shards across v7x's 2 TCs.
    if B < 8:
        tile_m_eff = B                       # full-dim row block (legal)
    else:
        tile_m_eff = min(tile_m, (B // 8) * 8)
        tile_m_eff = max(8, min(tile_m_eff, _round_up(pl.cdiv(B, 2), 8)))
    grid_m = pl.cdiv(B, tile_m_eff)

    # VMEM budget: blocks are small here; clamp against per-core capacity.
    block_bytes = (
        _nbytes((tile_m_eff, H), x.dtype) + _nbytes((H, H1p), w1p.dtype)
        + _nbytes((1, H1p), b1p.dtype) + _nbytes((H1p, Op), w2p.dtype)
        + _nbytes((1, Op), b2p.dtype) + _nbytes((tile_m_eff, Op), out_dtype)
    )
    try:
        vmem_cap = int(pltpu.get_tpu_info().vmem_capacity_bytes)
    except Exception:
        vmem_cap = 64 << 20                  # assume the smallest (v7x per-TC)
    vmem_limit = int(min(max(4 * block_bytes, 32 << 20), (vmem_cap * 7) // 8))

    cost = pl.CostEstimate(
        flops=2 * B * H * H1p + 2 * B * H1p * Op,
        transcendentals=0,
        bytes_accessed=(
            _nbytes((B, H), x.dtype) + _nbytes((H, H1p), w1p.dtype)
            + _nbytes((1, H1p), b1p.dtype) + _nbytes((H1p, Op), w2p.dtype)
            + _nbytes((1, Op), b2p.dtype) + _nbytes((B, Op), out_dtype)
        ),
    )

    def _run(single_buffer):
        in_specs = [
            # Rows tiled over the grid; feature dim = full array dim (no pad).
            pl.BlockSpec((tile_m_eff, H), lambda i: (i, 0)),
            # Weights/biases: constant block index -> VMEM resident.
            _resident_spec((H, H1p), single_buffer),
            _resident_spec((1, H1p), single_buffer),
            _resident_spec((H1p, Op), single_buffer),
            _resident_spec((1, Op), single_buffer),
        ]
        return pl.pallas_call(
            _mlp_kernel,
            out_shape=jax.ShapeDtypeStruct((B, Op), out_dtype),
            grid=(grid_m,),
            in_specs=in_specs,
            out_specs=pl.BlockSpec((tile_m_eff, Op), lambda i: (i, 0)),
            compiler_params=pltpu.CompilerParams(
                dimension_semantics=("parallel",),
                vmem_limit_bytes=vmem_limit,
            ),
            cost_estimate=cost,
        )(x, w1p, b1p, w2p, b2p)

    if single_buffer_weights:
        try:
            out_padded = _run(True)
        except Exception:
            # Fall back to default double-buffered resident blocks.
            out_padded = _run(False)
    else:
        out_padded = _run(False)

    return out_padded[:, :O]


if __name__ == "__main__":
    # Small shapes consistent with the module: x is (batch, hidden_dim).
    batch, hidden_dim, output_dim = 8, 100, 2
    bound = 1.0 / float(hidden_dim) ** 0.5

    key = jax.random.PRNGKey(0)
    kx, k1, k2, k3, k4 = jax.random.split(key, 5)
    x = jax.random.normal(kx, (batch, hidden_dim), jnp.float32)
    # torch nn.Linear layout: weight (out_features, in_features), bias (out,)
    w1 = jax.random.uniform(k1, (hidden_dim, hidden_dim), jnp.float32,
                            minval=-bound, maxval=bound)
    b1 = jax.random.uniform(k2, (hidden_dim,), jnp.float32,
                            minval=-bound, maxval=bound)
    w2 = jax.random.uniform(k3, (output_dim, hidden_dim), jnp.float32,
                            minval=-bound, maxval=bound)
    b2 = jax.random.uniform(k4, (output_dim,), jnp.float32,
                            minval=-bound, maxval=bound)

    # One-time packing (pad + transpose); not part of the per-call path.
    params = prepare_params(w1, b1, w2, b2)

    out = network3_forward(x, *params, output_dim=output_dim)
    out = jax.block_until_ready(out)

    # Pure-JAX reference of the torch forward semantics.
    ref = jnp.maximum(jnp.maximum(x @ w1.T + b1, 0.0) @ w2.T + b2, 0.0)
    assert out.shape == (batch, output_dim)
    assert jnp.allclose(out, ref, atol=1e-4, rtol=1e-4), \
        float(jnp.max(jnp.abs(out - ref)))

    print("KERNEL_OK")
</pallas_src>

<mosaic_0001>
module attributes {stable_mosaic.version = 11 : i64} {
  func.func @_mlp_kernel(%arg0: i32, %arg1: memref<8x100xf32, #tpu.memory_space<vmem>>, %arg2: memref<100x128xf32, #tpu.memory_space<vmem>>, %arg3: memref<1x128xf32, #tpu.memory_space<vmem>>, %arg4: memref<128x128xf32, #tpu.memory_space<vmem>>, %arg5: memref<1x128xf32, #tpu.memory_space<vmem>>, %arg6: memref<8x128xf32, #tpu.memory_space<vmem>>) attributes {dimension_semantics = [#tpu.dimension_semantics<parallel>], iteration_bounds = array<i64: 1>, scalar_prefetch = 0 : i64, scratch_operands = 0 : i64, tpu.core_type = #tpu.core_type<tc>, window_params = [{transform_indices = @transform_0, window_bounds = array<i64: 8, 100>}, {pipeline_mode = #tpu.pipeline_mode<synchronous>, transform_indices = @transform_1, window_bounds = array<i64: 100, 128>}, {pipeline_mode = #tpu.pipeline_mode<synchronous>, transform_indices = @transform_2, window_bounds = array<i64: 1, 128>}, {pipeline_mode = #tpu.pipeline_mode<synchronous>, transform_indices = @transform_3, window_bounds = array<i64: 128, 128>}, {pipeline_mode = #tpu.pipeline_mode<synchronous>, transform_indices = @transform_4, window_bounds = array<i64: 1, 128>}, {transform_indices = @transform_5, window_bounds = array<i64: 8, 128>}]} {
    %c0 = arith.constant 0 : index
    %c0_0 = arith.constant 0 : index
    %0 = vector.load %arg1[%c0, %c0_0] : memref<8x100xf32, #tpu.memory_space<vmem>>, vector<8x100xf32>
    %c0_1 = arith.constant 0 : index
    %c0_2 = arith.constant 0 : index
    %1 = vector.load %arg2[%c0_1, %c0_2] : memref<100x128xf32, #tpu.memory_space<vmem>>, vector<100x128xf32>
    %cst = arith.constant dense<0.000000e+00> : vector<8x128xf32>
    %2 = tpu.matmul %0, %1, %cst {dimension_numbers = #tpu.dot_dimension_numbers<[1], [0], [0], [1], [0, 0, 1, 1], [], []>} : vector<8x100xf32>, vector<100x128xf32>, vector<8x128xf32> -> vector<8x128xf32>
    %c0_3 = arith.constant 0 : index
    %c0_4 = arith.constant 0 : index
    %3 = vector.load %arg3[%c0_3, %c0_4] : memref<1x128xf32, #tpu.memory_space<vmem>>, vector<1x128xf32>
    %4 = vector.broadcast %3 : vector<1x128xf32> to vector<8x128xf32>
    %5 = arith.addf %2, %4 : vector<8x128xf32>
    %cst_5 = arith.constant 0.000000e+00 : f32
    %6 = vector.broadcast %cst_5 : f32 to vector<8x128xf32>
    %7 = arith.maximumf %5, %6 : vector<8x128xf32>
    %c0_6 = arith.constant 0 : index
    %c0_7 = arith.constant 0 : index
    %8 = vector.load %arg4[%c0_6, %c0_7] : memref<128x128xf32, #tpu.memory_space<vmem>>, vector<128x128xf32>
    %cst_8 = arith.constant dense<0.000000e+00> : vector<8x128xf32>
    %9 = tpu.matmul %7, %8, %cst_8 {dimension_numbers = #tpu.dot_dimension_numbers<[1], [0], [0], [1], [0, 0, 1, 1], [], []>} : vector<8x128xf32>, vector<128x128xf32>, vector<8x128xf32> -> vector<8x128xf32>
    %c0_9 = arith.constant 0 : index
    %c0_10 = arith.constant 0 : index
    %10 = vector.load %arg5[%c0_9, %c0_10] : memref<1x128xf32, #tpu.memory_space<vmem>>, vector<1x128xf32>
    %11 = vector.broadcast %10 : vector<1x128xf32> to vector<8x128xf32>
    %12 = arith.addf %9, %11 : vector<8x128xf32>
    %cst_11 = arith.constant 0.000000e+00 : f32
    %13 = vector.broadcast %cst_11 : f32 to vector<8x128xf32>
    %14 = arith.maximumf %12, %13 : vector<8x128xf32>
    %c0_12 = arith.constant 0 : index
    %c0_13 = arith.constant 0 : index
    %15 = vector.load %arg6[%c0_12, %c0_13] : memref<8x128xf32, #tpu.memory_space<vmem>>, vector<8x128xf32>
    tpu.vector_store %arg6[%c0_12, %c0_13], %14 {strides = array<i32>} : memref<8x128xf32, #tpu.memory_space<vmem>>, vector<8x128xf32>,
    return
  }
  func.func @transform_0(%arg0: i32) -> (i32, i32) {
    %c0_i32 = arith.constant 0 : i32
    %c0_i32_0 = arith.constant 0 : i32
    return %arg0, %c0_i32 : i32, i32
  }
  func.func @transform_1(%arg0: i32) -> (i32, i32) {
    %c0_i32 = arith.constant 0 : i32
    %c0_i32_0 = arith.constant 0 : i32
    %c0_i32_1 = arith.constant 0 : i32
    return %c0_i32, %c0_i32_0 : i32, i32
  }
  func.func @transform_2(%arg0: i32) -> (i32, i32) {
    %c0_i32 = arith.constant 0 : i32
    %c0_i32_0 = arith.constant 0 : i32
    %c0_i32_1 = arith.constant 0 : i32
    return %c0_i32, %c0_i32_0 : i32, i32
  }
  func.func @transform_3(%arg0: i32) -> (i32, i32) {
    %c0_i32 = arith.constant 0 : i32
    %c0_i32_0 = arith.constant 0 : i32
    %c0_i32_1 = arith.constant 0 : i32
    return %c0_i32, %c0_i32_0 : i32, i32
  }
  func.func @transform_4(%arg0: i32) -> (i32, i32) {
    %c0_i32 = arith.constant 0 : i32
    %c0_i32_0 = arith.constant 0 : i32
    %c0_i32_1 = arith.constant 0 : i32
    return %c0_i32, %c0_i32_0 : i32, i32
  }
  func.func @transform_5(%arg0: i32) -> (i32, i32) {
    %c0_i32 = arith.constant 0 : i32
    %c0_i32_0 = arith.constant 0 : i32
    return %arg0, %c0_i32 : i32, i32
  }
}

module attributes {stable_mosaic.version = 11 : i64} {
  func.func @_mlp_kernel(%arg0: i32, %arg1: memref<8x100xf32, #tpu.memory_space<vmem>>, %arg2: memref<100x128xf32, #tpu.memory_space<vmem>>, %arg3: memref<1x128xf32, #tpu.memory_space<vmem>>, %arg4: memref<128x128xf32, #tpu.memory_space<vmem>>, %arg5: memref<1x128xf32, #tpu.memory_space<vmem>>, %arg6: memref<8x128xf32, #tpu.memory_space<vmem>>) attributes {dimension_semantics = [#tpu.dimension_semantics<parallel>], iteration_bounds = array<i64: 1>, scalar_prefetch = 0 : i64, scratch_operands = 0 : i64, tpu.core_type = #tpu.core_type<tc>, window_params = [{transform_indices = @transform_0, window_bounds = array<i64: 8, 100>}, {pipeline_mode = #tpu.pipeline_mode<synchronous>, transform_indices = @transform_1, window_bounds = array<i64: 100, 128>}, {pipeline_mode = #tpu.pipeline_mode<synchronous>, transform_indices = @transform_2, window_bounds = array<i64: 1, 128>}, {pipeline_mode = #tpu.pipeline_mode<synchronous>, transform_indices = @transform_3, window_bounds = array<i64: 128, 128>}, {pipeline_mode = #tpu.pipeline_mode<synchronous>, transform_indices = @transform_4, window_bounds = array<i64: 1, 128>}, {transform_indices = @transform_5, window_bounds = array<i64: 8, 128>}]} {
    %c0 = arith.constant 0 : index
    %c0_0 = arith.constant 0 : index
    %0 = vector.load %arg1[%c0, %c0_0] : memref<8x100xf32, #tpu.memory_space<vmem>>, vector<8x100xf32>
    %c0_1 = arith.constant 0 : index
    %c0_2 = arith.constant 0 : index
    %1 = vector.load %arg2[%c0_1, %c0_2] : memref<100x128xf32, #tpu.memory_space<vmem>>, vector<100x128xf32>
    %cst = arith.constant dense<0.000000e+00> : vector<8x128xf32>
    %2 = tpu.matmul %0, %1, %cst {dimension_numbers = #tpu.dot_dimension_numbers<[1], [0], [0], [1], [0, 0, 1, 1], [], []>} : vector<8x100xf32>, vector<100x128xf32>, vector<8x128xf32> -> vector<8x128xf32>
    %c0_3 = arith.constant 0 : index
    %c0_4 = arith.constant 0 : index
    %3 = vector.load %arg3[%c0_3, %c0_4] : memref<1x128xf32, #tpu.memory_space<vmem>>, vector<1x128xf32>
    %4 = vector.broadcast %3 : vector<1x128xf32> to vector<8x128xf32>
    %5 = arith.addf %2, %4 : vector<8x128xf32>
    %cst_5 = arith.constant 0.000000e+00 : f32
    %6 = vector.broadcast %cst_5 : f32 to vector<8x128xf32>
    %7 = arith.maximumf %5, %6 : vector<8x128xf32>
    %c0_6 = arith.constant 0 : index
    %c0_7 = arith.constant 0 : index
    %8 = vector.load %arg4[%c0_6, %c0_7] : memref<128x128xf32, #tpu.memory_space<vmem>>, vector<128x128xf32>
    %cst_8 = arith.constant dense<0.000000e+00> : vector<8x128xf32>
    %9 = tpu.matmul %7, %8, %cst_8 {dimension_numbers = #tpu.dot_dimension_numbers<[1], [0], [0], [1], [0, 0, 1, 1], [], []>} : vector<8x128xf32>, vector<128x128xf32>, vector<8x128xf32> -> vector<8x128xf32>
    %c0_9 = arith.constant 0 : index
    %c0_10 = arith.constant 0 : index
    %10 = vector.load %arg5[%c0_9, %c0_10] : memref<1x128xf32, #tpu.memory_space<vmem>>, vector<1x128xf32>
    %11 = vector.broadcast %10 : vector<1x128xf32> to vector<8x128xf32>
    %12 = arith.addf %9, %11 : vector<8x128xf32>
    %cst_11 = arith.constant 0.000000e+00 : f32
    %13 = vector.broadcast %cst_11 : f32 to vector<8x128xf32>
    %14 = arith.maximumf %12, %13 : vector<8x128xf32>
    %c0_12 = arith.constant 0 : index
    %c0_13 = arith.constant 0 : index
    %15 = vector.load %arg6[%c0_12, %c0_13] : memref<8x128xf32, #tpu.memory_space<vmem>>, vector<8x128xf32>
    tpu.vector_store %arg6[%c0_12, %c0_13], %14 {strides = array<i32>} : memref<8x128xf32, #tpu.memory_space<vmem>>, vector<8x128xf32>,
    return
  }
  func.func @transform_0(%arg0: i32) -> (i32, i32) {
    %c0_i32 = arith.constant 0 : i32
    %c0_i32_0 = arith.constant 0 : i32
    return %arg0, %c0_i32 : i32, i32
  }
  func.func @transform_1(%arg0: i32) -> (i32, i32) {
    %c0_i32 = arith.constant 0 : i32
    %c0_i32_0 = arith.constant 0 : i32
    %c0_i32_1 = arith.constant 0 : i32
    return %c0_i32, %c0_i32_0 : i32, i32
  }
  func.func @transform_2(%arg0: i32) -> (i32, i32) {
    %c0_i32 = arith.constant 0 : i32
    %c0_i32_0 = arith.constant 0 : i32
    %c0_i32_1 = arith.constant 0 : i32
    return %c0_i32, %c0_i32_0 : i32, i32
  }
  func.func @transform_3(%arg0: i32) -> (i32, i32) {
    %c0_i32 = arith.constant 0 : i32
    %c0_i32_0 = arith.constant 0 : i32
    %c0_i32_1 = arith.constant 0 : i32
    return %c0_i32, %c0_i32_0 : i32, i32
  }
  func.func @transform_4(%arg0: i32) -> (i32, i32) {
    %c0_i32 = arith.constant 0 : i32
    %c0_i32_0 = arith.constant 0 : i32
    %c0_i32_1 = arith.constant 0 : i32
    return %c0_i32, %c0_i32_0 : i32, i32
  }
  func.func @transform_5(%arg0: i32) -> (i32, i32) {
    %c0_i32 = arith.constant 0 : i32
    %c0_i32_0 = arith.constant 0 : i32
    return %arg0, %c0_i32 : i32, i32
  }
}

</mosaic_0001>

<bundles_post_ra>
// kernel: tpu_custom_call.1
= control target key start
LH: loop header
LB: loop body
LE: loop exit
PB: predicated region body
PF: predicated region fallthrough
CT: control target
= control target key end

     0   :  { %10 = vsyncpa [#allocation3], 0  ;;  %s339_s0 = inlined_call_operand.hbm [shape: f32[8,100], index: 0, kind: input, shape index: {}]   ;;  %s340_s1 = inlined_call_operand.hbm [shape: f32[100,128], index: 1, kind: input, shape index: {}]   ;;  %s341_s2 = inlined_call_operand.vmem [shape: f32[1,128], index: 2, kind: input, shape index: {}]   ;;  %s342_s3 = inlined_call_operand.hbm [shape: f32[128,128], index: 3, kind: input, shape index: {}]   ;;  %s343_s4 = inlined_call_operand.vmem [shape: f32[1,128], index: 4, kind: input, shape index: {}]   ;;  %s344_s5 = inlined_call_operand.hbm [shape: f32[8,128], index: 5, kind: output, shape index: {}]  }
   0x1   :  { %11 = vsyncpa [#allocation6], 0  ;;  %s28_s20 = sshll.u32 %s340_s1, 4  ;;  %s29_s20 = int_to_ptr.hbm [resolvable:$true] %s28_s20 }
   0x2   :  { %12 = vsyncpa [#allocation4], 0  ;;  %s285_s21 = smov [#allocation5]   ;;  %s18_s25 = sshll.u32 %s339_s0, 4  ;;  %s19_s25 = int_to_ptr.hbm [resolvable:$true] %s18_s25 }
   0x3   :  { %s30_s22 = sshll.u32 %s285_s21, 4  ;;  %s286_s26 = smov 128   ;;  %s31_s22 = int_to_ptr.vmem [resolvable:$true] %s30_s22 }
   0x4   :  { %s287_s27 = smov 8   ;;  %s288_s28 = smov [#allocation2]  }
   0x5   :  { %36 = dma.hbm_to_vmem [thread:$0]  %s29_s20, 1664, %s31_s22, [#allocation6], %s286_s26, %s286_s26, %s287_s27  }
   0x6   :  { %s20_s29 = sshll.u32 %s288_s28, 4  ;;  %s43_s7 = sshll.u32 %s342_s3, 4  ;;  %s21_s29 = int_to_ptr.vmem [resolvable:$true] %s20_s29  ;;  %s44_s7 = int_to_ptr.hbm [resolvable:$true] %s43_s7 }
   0x7   :  { %23 = dma.hbm_to_vmem [thread:$0]  %s19_s25, 128, %s21_s29, [#allocation3]  }
   0x8   :  { %s289_s1 = smov [#allocation7]  }
   0x9   :  { %s45_s8 = sshll.u32 %s289_s1, 4  ;;  %s46_s8 = int_to_ptr.vmem [resolvable:$true] %s45_s8 }
   0xa   :  { %51 = dma.hbm_to_vmem [thread:$0]  %s44_s7, 2048, %s46_s8, [#allocation6], %s286_s26, %s286_s26, %s287_s27  }
   0xb   :  { %279 = dma.done.wait [#allocation3], 128  }
   0xc   :  { %280 = vsyncadd [#allocation3], 4294967168 }
   0xd   :  { %281 = dma.done.wait [#allocation6], 3712  }
   0xe   :  { %282 = vsyncadd [#allocation6], 4294963584  ;;  %vm88_vm0 = vcmask 1043456   ;;  %v79_v0 = vld [vmem:[#allocation5 + $0x60] sm:$0xf]  ;;  %v78_v1 = vld [vmem:[#allocation5 + $0x58] sm:$0xff] }
   0xf   :  { %173 = vmatpush.msk.msra.mxu0 %vm88_vm0, %v79_v0  ;;  %v77_v2 = vld [vmem:[#allocation5 + $0x50] sm:$0xff]  ;;  %v76_v3 = vld [vmem:[#allocation5 + $0x48] sm:$0xff]  ;;  %v128_v4 = vld [vmem:[#allocation7 + $0x78] sm:$0xff]  ;;  %vm84_vm1 = vcmask 818176   ;;  %s290_s11 = smov [#allocation8]   ;;  %s162_s15 = sshll.u32 %s344_s5, 4  ;;  %s163_s15 = int_to_ptr.hbm [resolvable:$true] %s162_s15 }
  0x10   :  { %133 = vmatpush.msra.mxu1 %v128_v4  ;;  %v127_v5 = vld [vmem:[#allocation7 + $0x70] sm:$0xff]  ;;  %v75_v6 = vld [vmem:[#allocation5 + $0x40] sm:$0xff]  ;;  %v126_v7 = vld [vmem:[#allocation7 + $0x68] sm:$0xff]  ;;  %s160_s12 = sshll.u32 %s290_s11, 4  ;;  %s161_s12 = int_to_ptr.vmem [resolvable:$true] %s160_s12 }
  0x11   :  { %96 = vmatpush.msra.mxu0 %v78_v1  ;;  %v74_v8 = vld [vmem:[#allocation5 + $0x38] sm:$0xff]  ;;  %v125_v9 = vld [vmem:[#allocation7 + $0x60] sm:$0xff]  ;;  %v73_v10 = vld [vmem:[#allocation5 + $0x30] sm:$0xff] }
  0x12   :  { %134 = vmatpush.msra.mxu1 %v127_v5  ;;  %v124_v11 = vld [vmem:[#allocation7 + $0x58] sm:$0xff]  ;;  %v72_v12 = vld [vmem:[#allocation5 + $0x28] sm:$0xff]  ;;  %v123_v13 = vld [vmem:[#allocation7 + $0x50] sm:$0xff] }
  0x13   :  { %97 = vmatpush.msra.mxu0 %v77_v2  ;;  %v71_v14 = vld [vmem:[#allocation5 + $0x20] sm:$0xff]  ;;  %v122_v15 = vld [vmem:[#allocation7 + $0x48] sm:$0xff]  ;;  %v70_v16 = vld [vmem:[#allocation5 + $0x18] sm:$0xff] }
  0x14   :  { %135 = vmatpush.msra.mxu1 %v126_v7  ;;  %v121_v17 = vld [vmem:[#allocation7 + $0x40] sm:$0xff]  ;;  %v69_v18 = vld [vmem:[#allocation5 + $0x10] sm:$0xff]  ;;  %v120_v19 = vld [vmem:[#allocation7 + $0x38] sm:$0xff] }
  0x15   :  { %98 = vmatpush.msra.mxu0 %v76_v3  ;;  %v68_v20 = vld [vmem:[#allocation5 + $0x8] sm:$0xff]  ;;  %v119_v21 = vld [vmem:[#allocation7 + $0x30] sm:$0xff]  ;;  %v67_v22 = vld [vmem:[#allocation5] sm:$0xff] }
  0x16   :  { %136 = vmatpush.msra.mxu1 %v125_v9  ;;  %v118_v23 = vld [vmem:[#allocation7 + $0x28] sm:$0xff]  ;;  %v66_v24 = vld [vmem:[#allocation2] sm:$0xff]  ;;  %v117_v25 = vld [vmem:[#allocation7 + $0x20] sm:$0xff] }
  0x17   :  { %99 = vmatpush.msra.mxu0 %v75_v6  ;;  %v116_v26 = vld [vmem:[#allocation7 + $0x18] sm:$0xff]  ;;  %v115_v27 = vld [vmem:[#allocation7 + $0x10] sm:$0xff]  ;;  %v114_v28 = vld [vmem:[#allocation7 + $0x8] sm:$0xff] }
  0x18   :  { %137 = vmatpush.msra.mxu1 %v124_v11  ;;  %v113_v29 = vld [vmem:[#allocation7] sm:$0xff]  ;;  %v181_v30 = vld [vmem:[%s341_s2] ss:$0 sm:$0xff] }
  0x19   :  { %100 = vmatpush.msra.mxu0 %v74_v8  ;;  %v182_v34 = vld [vmem:[%s343_s4] ss:$0 sm:$0xff] }
  0x1a   :  { %138 = vmatpush.msra.mxu1 %v123_v13 }
  0x1b   :  { %101 = vmatpush.msra.mxu0 %v73_v10 }
  0x1c   :  { %139 = vmatpush.msra.mxu1 %v122_v15 }
  0x1d   :  { %102 = vmatpush.msra.mxu0 %v72_v12 }
  0x1e   :  { %140 = vmatpush.msra.mxu1 %v121_v17 }
  0x1f   :  { %103 = vmatpush.msra.mxu0 %v71_v14 }
  0x20   :  { %141 = vmatpush.msra.mxu1 %v120_v19 }
  0x21   :  { %104 = vmatpush.msra.mxu0 %v70_v16 }
  0x22   :  { %142 = vmatpush.msra.mxu1 %v119_v21 }
  0x23   :  { %105 = vmatpush.msra.mxu0 %v69_v18 }
  0x24   :  { %143 = vmatpush.msra.mxu1 %v118_v23 }
  0x25   :  { %106 = vmatpush.msra.mxu0 %v68_v20 }
  0x26   :  { %144 = vmatpush.msra.mxu1 %v117_v25 }
  0x27   :  { %107 = vmatpush.msra.mxu0 %v67_v22 }
  0x28   :  { %174 = vmatmul.msk.f32.vlgmr.msra.gmra.mxu0 %vm84_vm1, %v66_v24  ;;  %145 = vmatpush.msra.mxu1 %v116_v26 }
  0x2a   :  { %146 = vmatpush.msra.mxu1 %v115_v27 }
  0x2c   :  { %147 = vmatpush.msra.mxu1 %v114_v28 }
  0x2e   :  { %148 = vmatpush.msra.mxu1 %v113_v29 }
  0xa5   :  { %v109_v31 = vpop.f32.mrf.mxu0 }
  0xa6   :  { %v110_v32 = vadd.f32 %v181_v30, %v109_v31 }
  0xa8   :  { %v112_v33 = vmax.f32 %v110_v32, 0.0 }
  0xaa   :  { %149 = vmatmul.f32.vlgmr.msra.gmra.mxu1 %v112_v33 }
 0x127   :  { %v150_v35 = vpop.f32.mrf.mxu1 }
 0x128   :  { %v151_v36 = vadd.f32 %v182_v34, %v150_v35 }
 0x12a   :  { %v153_v37 = vmax.f32 %v151_v36, 0.0 }
 0x12c   :  { %154 = vst [vmem:[#allocation8] sm:$0xff] %v153_v37 }
 0x12d   :  { %165 = dma.vmem_to_hbm [thread:$0]  %s161_s12, 128, %s163_s15, [#allocation4]  }
 0x12e   :  { %283 = dma.done.wait [#allocation4], 128  }
 0x12f   :  { %284 = vsyncadd [#allocation4], 4294967168 }
 0x130   :  { %170 = vsyncpa [#allocation3], 1 }
 0x131   :  { %171 = vsyncpa [#allocation6], 1 }
 0x132   :  { %172 = vsyncpa [#allocation4], 1 }

// kernel: tpu_custom_call.1
= control target key start
LH: loop header
LB: loop body
LE: loop exit
PB: predicated region body
PF: predicated region fallthrough
CT: control target
= control target key end

     0   :  { %10 = vsyncpa [#allocation3], 0  ;;  %s339_s0 = inlined_call_operand.hbm [shape: f32[8,100], index: 0, kind: input, shape index: {}]   ;;  %s340_s1 = inlined_call_operand.hbm [shape: f32[100,128], index: 1, kind: input, shape index: {}]   ;;  %s341_s2 = inlined_call_operand.vmem [shape: f32[1,128], index: 2, kind: input, shape index: {}]   ;;  %s342_s3 = inlined_call_operand.hbm [shape: f32[128,128], index: 3, kind: input, shape index: {}]   ;;  %s343_s4 = inlined_call_operand.vmem [shape: f32[1,128], index: 4, kind: input, shape index: {}]   ;;  %s344_s5 = inlined_call_operand.hbm [shape: f32[8,128], index: 5, kind: output, shape index: {}]  }
   0x1   :  { %11 = vsyncpa [#allocation6], 0  ;;  %s28_s20 = sshll.u32 %s340_s1, 4  ;;  %s29_s20 = int_to_ptr.hbm [resolvable:$true] %s28_s20 }
   0x2   :  { %12 = vsyncpa [#allocation4], 0  ;;  %s285_s21 = smov [#allocation5]   ;;  %s18_s25 = sshll.u32 %s339_s0, 4  ;;  %s19_s25 = int_to_ptr.hbm [resolvable:$true] %s18_s25 }
   0x3   :  { %s30_s22 = sshll.u32 %s285_s21, 4  ;;  %s286_s26 = smov 128   ;;  %s31_s22 = int_to_ptr.vmem [resolvable:$true] %s30_s22 }
   0x4   :  { %s287_s27 = smov 8   ;;  %s288_s28 = smov [#allocation2]  }
   0x5   :  { %36 = dma.hbm_to_vmem [thread:$0]  %s29_s20, 1664, %s31_s22, [#allocation6], %s286_s26, %s286_s26, %s287_s27  }
   0x6   :  { %s20_s29 = sshll.u32 %s288_s28, 4  ;;  %s43_s7 = sshll.u32 %s342_s3, 4  ;;  %s21_s29 = int_to_ptr.vmem [resolvable:$true] %s20_s29  ;;  %s44_s7 = int_to_ptr.hbm [resolvable:$true] %s43_s7 }
   0x7   :  { %23 = dma.hbm_to_vmem [thread:$0]  %s19_s25, 128, %s21_s29, [#allocation3]  }
   0x8   :  { %s289_s1 = smov [#allocation7]  }
   0x9   :  { %s45_s8 = sshll.u32 %s289_s1, 4  ;;  %s46_s8 = int_to_ptr.vmem [resolvable:$true] %s45_s8 }
   0xa   :  { %51 = dma.hbm_to_vmem [thread:$0]  %s44_s7, 2048, %s46_s8, [#allocation6], %s286_s26, %s286_s26, %s287_s27  }
   0xb   :  { %279 = dma.done.wait [#allocation3], 128  }
   0xc   :  { %280 = vsyncadd [#allocation3], 4294967168 }
   0xd   :  { %281 = dma.done.wait [#allocation6], 3712  }
   0xe   :  { %282 = vsyncadd [#allocation6], 4294963584  ;;  %vm88_vm0 = vcmask 1043456   ;;  %v79_v0 = vld [vmem:[#allocation5 + $0x60] sm:$0xf]  ;;  %v78_v1 = vld [vmem:[#allocation5 + $0x58] sm:$0xff] }
   0xf   :  { %173 = vmatpush.msk.msra.mxu0 %vm88_vm0, %v79_v0  ;;  %v77_v2 = vld [vmem:[#allocation5 + $0x50] sm:$0xff]  ;;  %v76_v3 = vld [vmem:[#allocation5 + $0x48] sm:$0xff]  ;;  %v128_v4 = vld [vmem:[#allocation7 + $0x78] sm:$0xff]  ;;  %vm84_vm1 = vcmask 818176   ;;  %s290_s11 = smov [#allocation8]   ;;  %s162_s15 = sshll.u32 %s344_s5, 4  ;;  %s163_s15 = int_to_ptr.hbm [resolvable:$true] %s162_s15 }
  0x10   :  { %133 = vmatpush.msra.mxu1 %v128_v4  ;;  %v127_v5 = vld [vmem:[#allocation7 + $0x70] sm:$0xff]  ;;  %v75_v6 = vld [vmem:[#allocation5 + $0x40] sm:$0xff]  ;;  %v126_v7 = vld [vmem:[#allocation7 + $0x68] sm:$0xff]  ;;  %s160_s12 = sshll.u32 %s290_s11, 4  ;;  %s161_s12 = int_to_ptr.vmem [resolvable:$true] %s160_s12 }
  0x11   :  { %96 = vmatpush.msra.mxu0 %v78_v1  ;;  %v74_v8 = vld [vmem:[#allocation5 + $0x38] sm:$0xff]  ;;  %v125_v9 = vld [vmem:[#allocation7 + $0x60] sm:$0xff]  ;;  %v73_v10 = vld [vmem:[#allocation5 + $0x30] sm:$0xff] }
  0x12   :  { %134 = vmatpush.msra.mxu1 %v127_v5  ;;  %v124_v11 = vld [vmem:[#allocation7 + $0x58] sm:$0xff]  ;;  %v72_v12 = vld [vmem:[#allocation5 + $0x28] sm:$0xff]  ;;  %v123_v13 = vld [vmem:[#allocation7 + $0x50] sm:$0xff] }
  0x13   :  { %97 = vmatpush.msra.mxu0 %v77_v2  ;;  %v71_v14 = vld [vmem:[#allocation5 + $0x20] sm:$0xff]  ;;  %v122_v15 = vld [vmem:[#allocation7 + $0x48] sm:$0xff]  ;;  %v70_v16 = vld [vmem:[#allocation5 + $0x18] sm:$0xff] }
  0x14   :  { %135 = vmatpush.msra.mxu1 %v126_v7  ;;  %v121_v17 = vld [vmem:[#allocation7 + $0x40] sm:$0xff]  ;;  %v69_v18 = vld [vmem:[#allocation5 + $0x10] sm:$0xff]  ;;  %v120_v19 = vld [vmem:[#allocation7 + $0x38] sm:$0xff] }
  0x15   :  { %98 = vmatpush.msra.mxu0 %v76_v3  ;;  %v68_v20 = vld [vmem:[#allocation5 + $0x8] sm:$0xff]  ;;  %v119_v21 = vld [vmem:[#allocation7 + $0x30] sm:$0xff]  ;;  %v67_v22 = vld [vmem:[#allocation5] sm:$0xff] }
  0x16   :  { %136 = vmatpush.msra.mxu1 %v125_v9  ;;  %v118_v23 = vld [vmem:[#allocation7 + $0x28] sm:$0xff]  ;;  %v66_v24 = vld [vmem:[#allocation2] sm:$0xff]  ;;  %v117_v25 = vld [vmem:[#allocation7 + $0x20] sm:$0xff] }
  0x17   :  { %99 = vmatpush.msra.mxu0 %v75_v6  ;;  %v116_v26 = vld [vmem:[#allocation7 + $0x18] sm:$0xff]  ;;  %v115_v27 = vld [vmem:[#allocation7 + $0x10] sm:$0xff]  ;;  %v114_v28 = vld [vmem:[#allocation7 + $0x8] sm:$0xff] }
  0x18   :  { %137 = vmatpush.msra.mxu1 %v124_v11  ;;  %v113_v29 = vld [vmem:[#allocation7] sm:$0xff]  ;;  %v181_v30 = vld [vmem:[%s341_s2] ss:$0 sm:$0xff] }
  0x19   :  { %100 = vmatpush.msra.mxu0 %v74_v8  ;;  %v182_v34 = vld [vmem:[%s343_s4] ss:$0 sm:$0xff] }
  0x1a   :  { %138 = vmatpush.msra.mxu1 %v123_v13 }
  0x1b   :  { %101 = vmatpush.msra.mxu0 %v73_v10 }
  0x1c   :  { %139 = vmatpush.msra.mxu1 %v122_v15 }
  0x1d   :  { %102 = vmatpush.msra.mxu0 %v72_v12 }
  0x1e   :  { %140 = vmatpush.msra.mxu1 %v121_v17 }
  0x1f   :  { %103 = vmatpush.msra.mxu0 %v71_v14 }
  0x20   :  { %141 = vmatpush.msra.mxu1 %v120_v19 }
  0x21   :  { %104 = vmatpush.msra.mxu0 %v70_v16 }
  0x22   :  { %142 = vmatpush.msra.mxu1 %v119_v21 }
  0x23   :  { %105 = vmatpush.msra.mxu0 %v69_v18 }
  0x24   :  { %143 = vmatpush.msra.mxu1 %v118_v23 }
  0x25   :  { %106 = vmatpush.msra.mxu0 %v68_v20 }
  0x26   :  { %144 = vmatpush.msra.mxu1 %v117_v25 }
  0x27   :  { %107 = vmatpush.msra.mxu0 %v67_v22 }
  0x28   :  { %174 = vmatmul.msk.f32.vlgmr.msra.gmra.mxu0 %vm84_vm1, %v66_v24  ;;  %145 = vmatpush.msra.mxu1 %v116_v26 }
  0x2a   :  { %146 = vmatpush.msra.mxu1 %v115_v27 }
  0x2c   :  { %147 = vmatpush.msra.mxu1 %v114_v28 }
  0x2e   :  { %148 = vmatpush.msra.mxu1 %v113_v29 }
  0xa5   :  { %v109_v31 = vpop.f32.mrf.mxu0 }
  0xa6   :  { %v110_v32 = vadd.f32 %v181_v30, %v109_v31 }
  0xa8   :  { %v112_v33 = vmax.f32 %v110_v32, 0.0 }
  0xaa   :  { %149 = vmatmul.f32.vlgmr.msra.gmra.mxu1 %v112_v33 }
 0x127   :  { %v150_v35 = vpop.f32.mrf.mxu1 }
 0x128   :  { %v151_v36 = vadd.f32 %v182_v34, %v150_v35 }
 0x12a   :  { %v153_v37 = vmax.f32 %v151_v36, 0.0 }
 0x12c   :  { %154 = vst [vmem:[#allocation8] sm:$0xff] %v153_v37 }
 0x12d   :  { %165 = dma.vmem_to_hbm [thread:$0]  %s161_s12, 128, %s163_s15, [#allocation4]  }
 0x12e   :  { %283 = dma.done.wait [#allocation4], 128  }
 0x12f   :  { %284 = vsyncadd [#allocation4], 4294967168 }
 0x130   :  { %170 = vsyncpa [#allocation3], 1 }
 0x131   :  { %171 = vsyncpa [#allocation6], 1 }
 0x132   :  { %172 = vsyncpa [#allocation4], 1 }

</bundles_post_ra>
